<compile_context>
chip_gen: v6e
topology: v6e:2x2x1
jax: 0.10.0
libtpu: 0.0.40
codegen_flags: <defaults>
</compile_context>

<pallas_src>
import functools

import jax
import jax.numpy as jnp
from jax.experimental import pallas as pl
from jax.experimental.pallas import tpu as pltpu

_LANES = 128
_SUBLANES = 8
_CHUNK_ROWS = 64  # in-kernel compute chunk (bounds live vregs; multiple of 8/16/32)


def _round_up(x, m):
    return ((x + m - 1) // m) * m


def _sublane_multiple(*dtypes):
    # (8,128) tile for 32-bit dtypes, (16,128) for 16-bit, (32,128) for 8-bit.
    m = _SUBLANES
    for dt in dtypes:
        m = max(m, _SUBLANES * max(1, 4 // jnp.dtype(dt).itemsize))
    return m


def _default_num_cores():
    # 2 TensorCores per chip on v7x (and megacore v4/v5p); 1 on v5e/v6e.
    try:
        kind = jax.devices()[0].device_kind.lower()
    except Exception:
        return 1
    if "lite" in kind or "v5e" in kind or "v6e" in kind:
        return 1
    if "v7" in kind or "v4" in kind or "v5p" in kind or kind.rstrip().endswith("v5"):
        return 2
    return 1


def _prob_loss_kernel(x_ref, t_ref, acc_ref, *, chunk_rows):
    """One grid step over a lane-dense batch tile.

    x_ref, t_ref : (3, TR, 128) blocks -> rows of [class0, class1, time], batch on lanes.
    acc_ref      : (3, 8, 128) f32 output block (resident accumulator across the inner
                   grid axis) holding raw partial sums of [kl, ce, mse].
    """
    i = pl.program_id(1)

    @pl.when(i == 0)
    def _init():
        acc_ref[...] = jnp.zeros_like(acc_ref)

    tr = x_ref.shape[1]
    num_chunks = tr // chunk_rows

    def fold(e):
        # (chunk_rows, 128) -> (8, 128) with plain VPU adds (no per-step XLU).
        return jnp.sum(e.reshape(chunk_rows // _SUBLANES, _SUBLANES, _LANES), axis=0)

    def body(j, carry):
        kl_acc, ce_acc, mse_acc = carry
        r0 = pl.multiple_of(j * chunk_rows, chunk_rows)
        x = x_ref[:, pl.ds(r0, chunk_rows), :].astype(jnp.float32)
        t = t_ref[:, pl.ds(r0, chunk_rows), :].astype(jnp.float32)
        x0, x1, xt = x[0], x[1], x[2]
        t0, t1, tt = t[0], t[1], t[2]

        # 2-class log-sum-exp (for CrossEntropyLoss(output[:, :2], ...)).
        m2 = jnp.maximum(x0, x1)
        lse2 = m2 + jnp.log(jnp.exp(x0 - m2) + jnp.exp(x1 - m2))
        # 3-class log-sum-exp (for torch.log_softmax(output, dim=1)) via safe softplus:
        # lse3 = lse2 + softplus(xt - lse2), softplus(z) = max(z,0) + log(1 + exp(-|z|)).
        z = xt - lse2
        lse = lse2 + jnp.maximum(z, 0.0) + jnp.log(1.0 + jnp.exp(-jnp.abs(z)))

        s_t = t0 + t1
        tx = t0 * x0 + t1 * x1

        # KLDiv pointwise: t>0 ? t*(log t - logp) : 0.  Note -(t0*lp0 + t1*lp1) = s_t*lse - tx.
        def xlogx(tv):
            return jnp.where(tv > 0, tv * jnp.log(jnp.maximum(tv, 1e-30)), 0.0)

        kl_elem = xlogx(t0) + xlogx(t1) + (s_t * lse - tx)
        # CrossEntropy with soft (probability) targets: -(t0*logp2_0 + t1*logp2_1).
        ce_elem = s_t * lse2 - tx
        # MSE on the time column.
        d = xt - tt
        mse_elem = d * d

        return (kl_acc + fold(kl_elem), ce_acc + fold(ce_elem), mse_acc + fold(mse_elem))

    zero = jnp.zeros((_SUBLANES, _LANES), jnp.float32)
    kl_s, ce_s, mse_s = jax.lax.fori_loop(0, num_chunks, body, (zero, zero, zero))

    acc_ref[0] += kl_s
    acc_ref[1] += ce_s
    acc_ref[2] += mse_s


def prob_loss(output, target, alpha=1.0, beta=1.0, gamma=1.0,
              *, max_block_rows=512, num_cores=None):
    """Pallas-TPU ProbLoss. Returns (loss, kl_loss, ce_loss, time_loss) as f32 scalars."""
    assert output.ndim == 2 and output.shape == target.shape
    assert output.shape[1] == 3, "ProbLoss expects exactly [class0, class1, time] columns"
    n = output.shape[0]
    if num_cores is None:
        num_cores = _default_num_cores()

    subm = _sublane_multiple(output.dtype, target.dtype)

    # ---- lane-dense relayout: batch -> (rows, 128); one (3, rows, 128) array per input ----
    rows_total = max(1, _round_up(n, _LANES) // _LANES)          # rows of 128 batch elements
    rows_per_core = -(-rows_total // num_cores)
    tr_req = _round_up(rows_per_core, subm)
    if tr_req >= _CHUNK_ROWS:
        tr = min(_round_up(max_block_rows, _CHUNK_ROWS), _round_up(tr_req, _CHUNK_ROWS))
        ch = _CHUNK_ROWS
    else:
        tr = tr_req
        ch = tr
    rows_padded = _round_up(rows_total, num_cores * tr)
    inner_steps = rows_padded // (num_cores * tr)
    n_pad = rows_padded * _LANES

    def relayout(a):
        a = jnp.pad(a, ((0, n_pad - n), (0, 0)))                 # zero rows contribute 0
        return jnp.transpose(a).reshape(3, rows_padded, _LANES)

    x3 = relayout(output)   # native dtype (bf16 OK); the kernel casts to f32
    t3 = relayout(target)

    in_map = lambda c, i: (0, c * inner_steps + i, 0)

    partials = pl.pallas_call(
        functools.partial(_prob_loss_kernel, chunk_rows=ch),
        out_shape=jax.ShapeDtypeStruct((num_cores * 3, _SUBLANES, _LANES), jnp.float32),
        grid_spec=pltpu.PrefetchScalarGridSpec(
            num_scalar_prefetch=0,
            grid=(num_cores, inner_steps),
            in_specs=[
                pl.BlockSpec((3, tr, _LANES), in_map),
                pl.BlockSpec((3, tr, _LANES), in_map),
            ],
            out_specs=pl.BlockSpec((3, _SUBLANES, _LANES), lambda c, i: (c, 0, 0)),
        ),
        compiler_params=pltpu.CompilerParams(
            dimension_semantics=("parallel", "arbitrary"),
            allow_input_fusion=[True, True],   # fuse pad/transpose relayout into operand read
        ),
    )(x3, t3)

    # Tiny epilogue in XLA: combine per-core partials, reduce lanes/sublanes, scale by 1/N.
    sums = jnp.sum(partials.reshape(num_cores, 3, _SUBLANES, _LANES), axis=(0, 2, 3))
    inv_n = jnp.float32(1.0 / n)
    kl = sums[0] * inv_n
    ce = sums[1] * inv_n
    mse = sums[2] * inv_n
    loss = jnp.float32(alpha) * ce + jnp.float32(beta) * kl + jnp.float32(gamma) * mse
    return loss, kl, ce, mse


def _prob_loss_ref(output, target, alpha=1.0, beta=1.0, gamma=1.0):
    # Pure-JAX reference mirroring the PyTorch module (silent sanity check).
    n = output.shape[0]
    out_f = output.astype(jnp.float32)
    tgt_f = target.astype(jnp.float32)
    logp_full = jax.nn.log_softmax(out_f, axis=1)
    t2 = tgt_f[:, :2]
    lp2 = logp_full[:, :2]
    kl = jnp.sum(jnp.where(t2 > 0, t2 * (jnp.log(jnp.where(t2 > 0, t2, 1.0)) - lp2), 0.0)) / n
    logp2 = jax.nn.log_softmax(out_f[:, :2], axis=1)
    ce = -jnp.sum(t2 * logp2) / n
    mse = jnp.mean((out_f[:, 2] - tgt_f[:, 2]) ** 2)
    return alpha * ce + beta * kl + gamma * mse, kl, ce, mse


if __name__ == "__main__":
    key = jax.random.PRNGKey(0)
    k1, k2, k3 = jax.random.split(key, 3)

    N, C = 8, 3  # batch=8, 2 class logits + 1 time value
    output = jax.random.normal(k1, (N, C), dtype=jnp.float32)

    # target: first two columns are a probability distribution, third is a time value
    probs = jax.nn.softmax(jax.random.normal(k2, (N, 2), dtype=jnp.float32), axis=1)
    t_time = jax.random.normal(k3, (N, 1), dtype=jnp.float32)
    target = jnp.concatenate([probs, t_time], axis=1)

    fn = jax.jit(prob_loss)   # jit so the relayout fuses into the pallas_call operand read
    loss, kl, ce, mse = fn(output, target)
    jax.block_until_ready((loss, kl, ce, mse))

    # silent correctness check against pure-JAX reference
    ref = _prob_loss_ref(output, target)
    for got, want in zip((loss, kl, ce, mse), ref):
        assert jnp.allclose(got, want, rtol=1e-5, atol=1e-5), (got, want)

    print("KERNEL_OK")
</pallas_src>

<mosaic_0001>
module attributes {stable_mosaic.version = 11 : i64} {
  func.func @_prob_loss_kernel(%arg0: i32, %arg1: i32, %arg2: memref<3x8x128xf32, #tpu.memory_space<vmem>>, %arg3: memref<3x8x128xf32, #tpu.memory_space<vmem>>, %arg4: memref<3x8x128xf32, #tpu.memory_space<vmem>>) attributes {dimension_semantics = [#tpu.dimension_semantics<parallel>, #tpu.dimension_semantics<arbitrary>], iteration_bounds = array<i64: 1, 1>, scalar_prefetch = 0 : i64, scratch_operands = 0 : i64, tpu.core_type = #tpu.core_type<tc>, window_params = [{transform_indices = @transform_0, window_bounds = array<i64: 3, 8, 128>}, {transform_indices = @transform_1, window_bounds = array<i64: 3, 8, 128>}, {transform_indices = @transform_2, window_bounds = array<i64: 3, 8, 128>}]} {
    %c0_i32 = arith.constant 0 : i32
    %0 = arith.cmpi eq, %arg1, %c0_i32 : i32
    %1 = arith.extui %0 : i1 to i32
    %c0_i32_0 = arith.constant 0 : i32
    %2 = arith.cmpi ne, %1, %c0_i32_0 : i32
    scf.if %2 {
      %cst_33 = arith.constant 0.000000e+00 : f32
      %97 = vector.broadcast %cst_33 : f32 to vector<3x8x128xf32>
      %c0_34 = arith.constant 0 : index
      %c0_35 = arith.constant 0 : index
      %c0_36 = arith.constant 0 : index
      %98 = vector.load %arg4[%c0_34, %c0_35, %c0_36] : memref<3x8x128xf32, #tpu.memory_space<vmem>>, vector<3x8x128xf32>
      tpu.vector_store %arg4[%c0_34, %c0_35, %c0_36], %97 {strides = array<i32>} : memref<3x8x128xf32, #tpu.memory_space<vmem>>, vector<3x8x128xf32>,
    } else {
    }
    %cst = arith.constant 0.000000e+00 : f32
    %3 = vector.broadcast %cst : f32 to vector<8x128xf32>
    %c0_i32_1 = arith.constant 0 : i32
    %c8_i32 = arith.constant 8 : i32
    %4 = arith.muli %c0_i32_1, %c8_i32 : i32
    %5 = tpu.assume_multiple %4, 8 : i32
    %c0 = arith.constant 0 : index
    %6 = arith.index_cast %5 : i32 to index
    %c0_2 = arith.constant 0 : index
    %7 = vector.load %arg2[%c0, %6, %c0_2] : memref<3x8x128xf32, #tpu.memory_space<vmem>>, vector<3x8x128xf32>
    %c0_3 = arith.constant 0 : index
    %8 = arith.index_cast %5 : i32 to index
    %c0_4 = arith.constant 0 : index
    %9 = vector.load %arg3[%c0_3, %8, %c0_4] : memref<3x8x128xf32, #tpu.memory_space<vmem>>, vector<3x8x128xf32>
    %10 = vector.extract_strided_slice %7 {offsets = [0, 0, 0], sizes = [1, 8, 128], strides = [1, 1, 1]} : vector<3x8x128xf32> to vector<1x8x128xf32>
    %11 = vector.shape_cast %10 : vector<1x8x128xf32> to vector<8x128xf32>
    %12 = vector.extract_strided_slice %7 {offsets = [1, 0, 0], sizes = [1, 8, 128], strides = [1, 1, 1]} : vector<3x8x128xf32> to vector<1x8x128xf32>
    %13 = vector.shape_cast %12 : vector<1x8x128xf32> to vector<8x128xf32>
    %14 = vector.extract_strided_slice %7 {offsets = [2, 0, 0], sizes = [1, 8, 128], strides = [1, 1, 1]} : vector<3x8x128xf32> to vector<1x8x128xf32>
    %15 = vector.shape_cast %14 : vector<1x8x128xf32> to vector<8x128xf32>
    %16 = vector.extract_strided_slice %9 {offsets = [0, 0, 0], sizes = [1, 8, 128], strides = [1, 1, 1]} : vector<3x8x128xf32> to vector<1x8x128xf32>
    %17 = vector.shape_cast %16 : vector<1x8x128xf32> to vector<8x128xf32>
    %18 = vector.extract_strided_slice %9 {offsets = [1, 0, 0], sizes = [1, 8, 128], strides = [1, 1, 1]} : vector<3x8x128xf32> to vector<1x8x128xf32>
    %19 = vector.shape_cast %18 : vector<1x8x128xf32> to vector<8x128xf32>
    %20 = vector.extract_strided_slice %9 {offsets = [2, 0, 0], sizes = [1, 8, 128], strides = [1, 1, 1]} : vector<3x8x128xf32> to vector<1x8x128xf32>
    %21 = vector.shape_cast %20 : vector<1x8x128xf32> to vector<8x128xf32>
    %22 = arith.maximumf %11, %13 : vector<8x128xf32>
    %23 = arith.subf %11, %22 : vector<8x128xf32>
    %24 = math.exp %23 : vector<8x128xf32>
    %25 = arith.subf %13, %22 : vector<8x128xf32>
    %26 = math.exp %25 : vector<8x128xf32>
    %27 = arith.addf %24, %26 : vector<8x128xf32>
    %28 = math.log %27 : vector<8x128xf32>
    %29 = arith.addf %22, %28 : vector<8x128xf32>
    %30 = arith.subf %15, %29 : vector<8x128xf32>
    %cst_5 = arith.constant 0.000000e+00 : f32
    %31 = vector.broadcast %cst_5 : f32 to vector<8x128xf32>
    %32 = arith.maximumf %30, %31 : vector<8x128xf32>
    %33 = arith.addf %29, %32 : vector<8x128xf32>
    %34 = math.absf %30 : vector<8x128xf32>
    %cst_6 = arith.constant 0.000000e+00 : f32
    %35 = vector.broadcast %cst_6 : f32 to vector<8x128xf32>
    %36 = arith.subf %35, %34 : vector<8x128xf32>
    %37 = math.exp %36 : vector<8x128xf32>
    %cst_7 = arith.constant 1.000000e+00 : f32
    %38 = vector.broadcast %cst_7 : f32 to vector<8x128xf32>
    %39 = arith.addf %38, %37 : vector<8x128xf32>
    %40 = math.log %39 : vector<8x128xf32>
    %41 = arith.addf %33, %40 : vector<8x128xf32>
    %42 = arith.addf %17, %19 : vector<8x128xf32>
    %43 = arith.mulf %17, %11 : vector<8x128xf32>
    %44 = arith.mulf %19, %13 : vector<8x128xf32>
    %45 = arith.addf %43, %44 : vector<8x128xf32>
    %cst_8 = arith.constant 0.000000e+00 : f32
    %46 = vector.broadcast %cst_8 : f32 to vector<8x128xf32>
    %47 = arith.cmpf ogt, %17, %46 : vector<8x128xf32>
    %cst_9 = arith.constant 1.000000e-30 : f32
    %48 = vector.broadcast %cst_9 : f32 to vector<8x128xf32>
    %49 = arith.maximumf %17, %48 : vector<8x128xf32>
    %50 = math.log %49 : vector<8x128xf32>
    %51 = arith.mulf %17, %50 : vector<8x128xf32>
    %cst_10 = arith.constant 0.000000e+00 : f32
    %52 = vector.broadcast %cst_10 : f32 to vector<8x128xf32>
    %53 = arith.select %47, %51, %52 : vector<8x128xi1>, vector<8x128xf32>
    %cst_11 = arith.constant 0.000000e+00 : f32
    %54 = vector.broadcast %cst_11 : f32 to vector<8x128xf32>
    %55 = arith.cmpf ogt, %19, %54 : vector<8x128xf32>
    %cst_12 = arith.constant 1.000000e-30 : f32
    %56 = vector.broadcast %cst_12 : f32 to vector<8x128xf32>
    %57 = arith.maximumf %19, %56 : vector<8x128xf32>
    %58 = math.log %57 : vector<8x128xf32>
    %59 = arith.mulf %19, %58 : vector<8x128xf32>
    %cst_13 = arith.constant 0.000000e+00 : f32
    %60 = vector.broadcast %cst_13 : f32 to vector<8x128xf32>
    %61 = arith.select %55, %59, %60 : vector<8x128xi1>, vector<8x128xf32>
    %62 = arith.addf %53, %61 : vector<8x128xf32>
    %63 = arith.mulf %42, %41 : vector<8x128xf32>
    %64 = arith.subf %63, %45 : vector<8x128xf32>
    %65 = arith.addf %62, %64 : vector<8x128xf32>
    %66 = arith.mulf %42, %29 : vector<8x128xf32>
    %67 = arith.subf %66, %45 : vector<8x128xf32>
    %68 = arith.subf %15, %21 : vector<8x128xf32>
    %69 = arith.mulf %68, %68 : vector<8x128xf32>
    %70 = vector.shape_cast %65 : vector<8x128xf32> to vector<1x8x128xf32>
    %cst_14 = arith.constant dense<0.000000e+00> : vector<8x128xf32>
    %71 = vector.multi_reduction <add>, %70, %cst_14 [0] : vector<1x8x128xf32> to vector<8x128xf32>
    %72 = arith.addf %3, %71 : vector<8x128xf32>
    %73 = vector.shape_cast %67 : vector<8x128xf32> to vector<1x8x128xf32>
    %cst_15 = arith.constant dense<0.000000e+00> : vector<8x128xf32>
    %74 = vector.multi_reduction <add>, %73, %cst_15 [0] : vector<1x8x128xf32> to vector<8x128xf32>
    %75 = arith.addf %3, %74 : vector<8x128xf32>
    %76 = vector.shape_cast %69 : vector<8x128xf32> to vector<1x8x128xf32>
    %cst_16 = arith.constant dense<0.000000e+00> : vector<8x128xf32>
    %77 = vector.multi_reduction <add>, %76, %cst_16 [0] : vector<1x8x128xf32> to vector<8x128xf32>
    %78 = arith.addf %3, %77 : vector<8x128xf32>
    %c1_i32 = arith.constant 1 : i32
    %c0_17 = arith.constant 0 : index
    %c0_18 = arith.constant 0 : index
    %c0_19 = arith.constant 0 : index
    %79 = vector.load %arg4[%c0_17, %c0_18, %c0_19] : memref<3x8x128xf32, #tpu.memory_space<vmem>>, vector<1x8x128xf32>
    %80 = vector.shape_cast %79 : vector<1x8x128xf32> to vector<8x128xf32>
    %81 = arith.addf %80, %72 : vector<8x128xf32>
    %c0_20 = arith.constant 0 : index
    %c0_21 = arith.constant 0 : index
    %c0_22 = arith.constant 0 : index
    %82 = vector.load %arg4[%c0_20, %c0_21, %c0_22] : memref<3x8x128xf32, #tpu.memory_space<vmem>>, vector<1x8x128xf32>
    %83 = vector.shape_cast %82 : vector<1x8x128xf32> to vector<8x128xf32>
    %84 = vector.shape_cast %81 : vector<8x128xf32> to vector<1x8x128xf32>
    tpu.vector_store %arg4[%c0_20, %c0_21, %c0_22], %84 {strides = array<i32>} : memref<3x8x128xf32, #tpu.memory_space<vmem>>, vector<1x8x128xf32>,
    %c1 = arith.constant 1 : index
    %c0_23 = arith.constant 0 : index
    %c0_24 = arith.constant 0 : index
    %85 = vector.load %arg4[%c1, %c0_23, %c0_24] : memref<3x8x128xf32, #tpu.memory_space<vmem>>, vector<1x8x128xf32>
    %86 = vector.shape_cast %85 : vector<1x8x128xf32> to vector<8x128xf32>
    %87 = arith.addf %86, %75 : vector<8x128xf32>
    %c1_25 = arith.constant 1 : index
    %c0_26 = arith.constant 0 : index
    %c0_27 = arith.constant 0 : index
    %88 = vector.load %arg4[%c1_25, %c0_26, %c0_27] : memref<3x8x128xf32, #tpu.memory_space<vmem>>, vector<1x8x128xf32>
    %89 = vector.shape_cast %88 : vector<1x8x128xf32> to vector<8x128xf32>
    %90 = vector.shape_cast %87 : vector<8x128xf32> to vector<1x8x128xf32>
    tpu.vector_store %arg4[%c1_25, %c0_26, %c0_27], %90 {strides = array<i32>} : memref<3x8x128xf32, #tpu.memory_space<vmem>>, vector<1x8x128xf32>,
    %c2 = arith.constant 2 : index
    %c0_28 = arith.constant 0 : index
    %c0_29 = arith.constant 0 : index
    %91 = vector.load %arg4[%c2, %c0_28, %c0_29] : memref<3x8x128xf32, #tpu.memory_space<vmem>>, vector<1x8x128xf32>
    %92 = vector.shape_cast %91 : vector<1x8x128xf32> to vector<8x128xf32>
    %93 = arith.addf %92, %78 : vector<8x128xf32>
    %c2_30 = arith.constant 2 : index
    %c0_31 = arith.constant 0 : index
    %c0_32 = arith.constant 0 : index
    %94 = vector.load %arg4[%c2_30, %c0_31, %c0_32] : memref<3x8x128xf32, #tpu.memory_space<vmem>>, vector<1x8x128xf32>
    %95 = vector.shape_cast %94 : vector<1x8x128xf32> to vector<8x128xf32>
    %96 = vector.shape_cast %93 : vector<8x128xf32> to vector<1x8x128xf32>
    tpu.vector_store %arg4[%c2_30, %c0_31, %c0_32], %96 {strides = array<i32>} : memref<3x8x128xf32, #tpu.memory_space<vmem>>, vector<1x8x128xf32>,
    return
  }
  func.func @transform_0(%arg0: i32, %arg1: i32) -> (i32, i32, i32) {
    %c1_i32 = arith.constant 1 : i32
    %0 = arith.muli %arg0, %c1_i32 : i32
    %1 = arith.addi %0, %arg1 : i32
    %c0_i32 = arith.constant 0 : i32
    %c0_i32_0 = arith.constant 0 : i32
    %c0_i32_1 = arith.constant 0 : i32
    return %c0_i32, %1, %c0_i32_0 : i32, i32, i32
  }
  func.func @transform_1(%arg0: i32, %arg1: i32) -> (i32, i32, i32) {
    %c1_i32 = arith.constant 1 : i32
    %0 = arith.muli %arg0, %c1_i32 : i32
    %1 = arith.addi %0, %arg1 : i32
    %c0_i32 = arith.constant 0 : i32
    %c0_i32_0 = arith.constant 0 : i32
    %c0_i32_1 = arith.constant 0 : i32
    return %c0_i32, %1, %c0_i32_0 : i32, i32, i32
  }
  func.func @transform_2(%arg0: i32, %arg1: i32) -> (i32, i32, i32) {
    %c0_i32 = arith.constant 0 : i32
    %c0_i32_0 = arith.constant 0 : i32
    %c0_i32_1 = arith.constant 0 : i32
    return %arg0, %c0_i32, %c0_i32_0 : i32, i32, i32
  }
}

</mosaic_0001>

<bundles_post_ra>
// kernel: prob_loss.2
= control target key start
LH: loop header
LB: loop body
LE: loop exit
PB: predicated region body
PF: predicated region fallthrough
CT: control target
= control target key end

     0   :  { %s234_s0 = inlined_call_operand.vmem [shape: f32[1,3,8,128], index: 0, kind: input, shape index: {}]   ;;  %s235_s1 = inlined_call_operand.vmem [shape: f32[1,3,8,128], index: 1, kind: input, shape index: {}]   ;;  %s236_s2 = inlined_call_operand.vmem [shape: f32[3,8,128], index: 2, kind: output, shape index: {}]  }
   0x1   :  { %v45_v0 = vld [vmem:[%s235_s1] sm:$0xff]  ;;  %v169_v1 = vld [vmem:[%s235_s1 + $0x8] sm:$0xff]  ;;  %v172_v2 = vld [vmem:[%s234_s0 + $0x10] sm:$0xff] }
   0x2   :  { %v90_v3 = vmax.f32 %v45_v0, %v169_v1  ;;  %v170_v4 = vld [vmem:[%s235_s1 + $0x10] sm:$0xff]  ;;  %v61_v15 = vld [vmem:[%s234_s0] sm:$0xff]  ;;  %v171_v16 = vld [vmem:[%s234_s0 + $0x8] sm:$0xff] }
   0x3   :  { %v134_v7 = vsub.f32 %v170_v4, %v172_v2  ;;  %v113_v18 = vmul.f32 %v61_v15, %v45_v0  ;;  %v114_v19 = vmul.f32 %v171_v16, %v169_v1  ;;  %v112_v21 = vadd.f32 %v171_v16, %v61_v15 }
   0x4   :  { %v91_v5 = vsub.f32 %v45_v0, %v90_v3  ;;  %v94_v6 = vsub.f32 %v169_v1, %v90_v3  ;;  %v117_v29 = vmax.f32 %v61_v15, 1e-30  ;;  %v123_v30 = vmax.f32 %v171_v16, 1e-30 }
   0x5   :  { %v135_v10 = vmul.f32 %v134_v7, %v134_v7  ;;  %v115_v23 = vadd.f32 %v114_v19, %v113_v18  ;;  %vm116_vm0 = vcmp.gt.f32.partialorder %v61_v15, 0.0  ;;  %vm122_vm1 = vcmp.gt.f32.partialorder %v171_v16, 0.0 }
   0x6   :  { %v92_v8 = vmul.f32 1.442695, %v91_v5  ;;  %v95_v9 = vmul.f32 1.442695, %v94_v6 }
   0x7   :  { %176 = vst [vmem:[%s236_s2 + $0x10] sm:$0xff] %v135_v10 }
   0x8   :  { %178 = vpow2.f32 %v92_v8 }
   0x9   :  { %180 = vpow2.f32 %v95_v9 }
  0x15   :  { %v179_v11 = vpop.eup %178 }
  0x16   :  { %v181_v12 = vpop.eup %180 }
  0x17   :  { %v97_v13 = vadd.f32 %v181_v12, %v179_v11 }
  0x19   :  { %182 = vlog2.f32 %v97_v13 }
  0x26   :  { %v183_v14 = vpop.eup %182 }
  0x27   :  { %v99_v17 = vmul.f32 0.6931472, %v183_v14 }
  0x29   :  { %v100_v20 = vadd.f32 %v99_v17, %v90_v3 }
  0x2b   :  { %v101_v22 = vsub.f32 %v170_v4, %v100_v20  ;;  %v132_v24 = vmul.f32 %v112_v21, %v100_v20 }
  0x2d   :  { %v104_v25 = vand.u32 2147483647, %v101_v22  ;;  %v133_v26 = vsub.f32 %v132_v24, %v115_v23  ;;  %v102_v37 = vmax.f32 %v101_v22, 0.0 }
  0x2f   :  { %v105_v27 = vsub.f32 0.0, %v104_v25  ;;  %174 = vst [vmem:[%s236_s2 + $0x8] sm:$0xff] %v133_v26  ;;  %v103_v40 = vadd.f32 %v102_v37, %v100_v20 }
  0x31   :  { %v106_v28 = vmul.f32 1.442695, %v105_v27 }
  0x33   :  { %184 = vpow2.f32 %v106_v28 }
  0x34   :  { %186 = vlog2.f32 %v117_v29 }
  0x35   :  { %188 = vlog2.f32 %v123_v30 }
  0x40   :  { %v185_v31 = vpop.eup %184 }
  0x41   :  { %v108_v32 = vadd.f32 1.0, %v185_v31  ;;  %v187_v33 = vpop.eup %186 }
  0x42   :  { %v189_v34 = vpop.eup %188  ;;  %v119_v35 = vmul.f32 0.6931472, %v187_v33 }
  0x43   :  { %190 = vlog2.f32 %v108_v32  ;;  %v125_v36 = vmul.f32 0.6931472, %v189_v34 }
  0x44   :  { %v120_v38 = vmul.f32 %v119_v35, %v61_v15 }
  0x45   :  { %v126_v39 = vmul.f32 %v171_v16, %v125_v36 }
  0x46   :  { %v121_v43 = vsel %vm116_vm0, %v120_v38, 0.0 }
  0x47   :  { %v127_v44 = vsel %vm122_vm1, %v126_v39, 0.0 }
  0x48   :  { %v128_v46 = vadd.f32 %v127_v44, %v121_v43 }
  0x50   :  { %v191_v41 = vpop.eup %190 }
  0x51   :  { %v110_v42 = vmul.f32 0.6931472, %v191_v41 }
  0x53   :  { %v111_v45 = vadd.f32 %v110_v42, %v103_v40 }
  0x55   :  { %v129_v47 = vmul.f32 %v112_v21, %v111_v45 }
  0x57   :  { %v130_v48 = vsub.f32 %v129_v47, %v115_v23 }
  0x59   :  { %v131_v49 = vadd.f32 %v130_v48, %v128_v46 }
  0x5b   :  { %144 = vst [vmem:[%s236_s2] sm:$0xff] %v131_v49 }

</bundles_post_ra>
